<compile_context>
chip_gen: v7x
topology: tpu7x:2x2x1
jax: 0.10.0
libtpu: 0.0.40
codegen_flags: <defaults>
</compile_context>

<pallas_src>
import jax
import jax.numpy as jnp
from jax.experimental import pallas as pl
from jax.experimental.pallas import tpu as pltpu


def _raht_hbm_copy_kernel(feat_hbm_ref, out_hbm_ref, copy_sem):
    # Single direct HBM -> HBM DMA; no VMEM staging, no vreg traffic.
    cp = pltpu.make_async_copy(feat_hbm_ref, out_hbm_ref, copy_sem)
    cp.start()
    cp.wait()


def raht_forward(voxel_xyz, features):
    """Mirror of RAHT.forward(voxel_xyz, features).

    voxel_xyz : (N, 3)  — unused by the (empty) reference forward.
    features  : (N, C)  — passed through via a single HBM->HBM DMA.
    """
    del voxel_xyz  # not consumed by the reference forward
    out = pl.pallas_call(
        _raht_hbm_copy_kernel,
        out_shape=jax.ShapeDtypeStruct(features.shape, features.dtype),
        in_specs=[pl.BlockSpec(memory_space=pl.ANY)],
        out_specs=pl.BlockSpec(memory_space=pl.ANY),
        scratch_shapes=[pltpu.SemaphoreType.DMA],
    )(features)
    return out


if __name__ == "__main__":
    key = jax.random.PRNGKey(0)
    k_xyz, k_feat = jax.random.split(key)

    # Small shapes consistent with (voxel coordinates, per-voxel features).
    N, C = 64, 8
    voxel_xyz = jax.random.randint(
        k_xyz, (N, 3), minval=0, maxval=16
    ).astype(jnp.int32)
    features = jax.random.normal(k_feat, (N, C), dtype=jnp.float32)

    out = raht_forward(voxel_xyz, features)
    out = jax.block_until_ready(out)

    # Sanity check: identity pass-through must match the input features.
    assert out.shape == (N, C)
    assert out.dtype == features.dtype
    assert bool(jnp.allclose(out, features))

    print("KERNEL_OK")
</pallas_src>

<mosaic_0001>
module attributes {stable_mosaic.version = 11 : i64} {
  func.func @_raht_hbm_copy_kernel(%arg0: memref<64x8xf32, #tpu.memory_space<any>>, %arg1: memref<64x8xf32, #tpu.memory_space<any>>, %arg2: memref<!tpu.dma_semaphore, #tpu.memory_space<semaphore_mem>>) attributes {dimension_semantics = [], scalar_prefetch = 0 : i64, scratch_operands = 1 : i64, tpu.core_type = #tpu.core_type<tc>} {
    tpu.enqueue_dma source(%arg0 : memref<64x8xf32, #tpu.memory_space<any>>) target(%arg1 : memref<64x8xf32, #tpu.memory_space<any>>) target_semaphore(%arg2 : memref<!tpu.dma_semaphore, #tpu.memory_space<semaphore_mem>>)
    tpu.wait_dma2 semaphore(%arg2 : memref<!tpu.dma_semaphore, #tpu.memory_space<semaphore_mem>>) src(%arg0 : memref<64x8xf32, #tpu.memory_space<any>>) dst(%arg1 : memref<64x8xf32, #tpu.memory_space<any>>)
    return
  }
}

</mosaic_0001>

<bundles_post_ra>
// kernel: tpu_custom_call.1
= control target key start
LH: loop header
LB: loop body
LE: loop exit
PB: predicated region body
PF: predicated region fallthrough
CT: control target
= control target key end

     0   :  { %s140_s0 = inlined_call_operand.vmem [shape: f32[64,8], index: 0, kind: input, shape index: {}]   ;;  %s141_s1 = inlined_call_operand.vmem [shape: f32[64,8], index: 1, kind: output, shape index: {}]  }
   0x1   :  { %v38_v0 = vld [vmem:[%s140_s0] sm:$0xff]  ;;  %v40_v1 = vld [vmem:[%s140_s0 + $0x8] sm:$0xff]  ;;  %v42_v2 = vld [vmem:[%s140_s0 + $0x10] sm:$0xff] }
   0x2   :  { %39 = vst [vmem:[%s141_s1] sm:$0xff] %v38_v0  ;;  %41 = vst [vmem:[%s141_s1 + $0x8] sm:$0xff] %v40_v1  ;;  %v44_v3 = vld [vmem:[%s140_s0 + $0x18] sm:$0xff]  ;;  %v46_v4 = vld [vmem:[%s140_s0 + $0x20] sm:$0xff] }
   0x3   :  { %43 = vst [vmem:[%s141_s1 + $0x10] sm:$0xff] %v42_v2  ;;  %v48_v5 = vld [vmem:[%s140_s0 + $0x28] sm:$0xff]  ;;  %45 = vst [vmem:[%s141_s1 + $0x18] sm:$0xff] %v44_v3  ;;  %v50_v6 = vld [vmem:[%s140_s0 + $0x30] sm:$0xff] }
   0x4   :  { %47 = vst [vmem:[%s141_s1 + $0x20] sm:$0xff] %v46_v4  ;;  %49 = vst [vmem:[%s141_s1 + $0x28] sm:$0xff] %v48_v5  ;;  %v52_v7 = vld [vmem:[%s140_s0 + $0x38] sm:$0xff] }
   0x5   :  { %51 = vst [vmem:[%s141_s1 + $0x30] sm:$0xff] %v50_v6  ;;  %53 = vst [vmem:[%s141_s1 + $0x38] sm:$0xff] %v52_v7 }
   0x6   :  { %61 = vsyncadd [#allocation2], 1024 }
   0x7   :  { %80 = dma.done.wait [#allocation2], 1024 }
   0x8   :  { %81 = vsyncadd [#allocation2], 4294966272 }
   0x9   :  { %65 = vsyncmov [#allocation2] }
   0xc   :  { %s66_s9 = vpop.sfrf %65 }
   0xd   :  { %p79_p0 = scmp.ne.s32.totalorder %s66_s9, 0 }
   0xf   :  { %70 = shalt.err (%p79_p0)  }

</bundles_post_ra>
